<compile_context>
chip_gen: v7x
topology: tpu7x:2x2x1
jax: 0.10.0
libtpu: 0.0.40
codegen_flags: <defaults>
</compile_context>

<pallas_src>
import functools

import numpy as np
import jax
import jax.numpy as jnp
from jax.experimental import pallas as pl
from jax.experimental.pallas import tpu as pltpu


# ----------------------------------------------------------------------------
# Pallas kernel: one batch image per grid step, everything is a 2-D MXU matmul
# ----------------------------------------------------------------------------
def fourier_conv_kernel(
    x_ref,                      # (1, C, H*W)      VMEM, lane-dense
    mfr_ref, mfi_ref,           # (H*W, H*Wf)      forward rfft2 (Re / Im parts)
    mir_ref, mii_ref,           # (H*Wf, H*W)      inverse rfft2 (border cols zeroed)
    w1l_ref, w1r_ref,           # (2*OC, C)        mix weights (output conv folded in)
    b1_ref,                     # (2*OC, 1)        mix bias (Re rows then Im rows), f32
    b2_ref,                     # (OC, 1)          output conv bias, f32
    out_ref,                    # (1, OC, H*W)     lane-dense output block
    *, mm_dtype,
):
    f32 = jnp.float32
    OC = out_ref.shape[1]

    def mm(a, b):               # MXU matmul, f32 accumulation
        return jnp.dot(a.astype(mm_dtype), b.astype(mm_dtype),
                       preferred_element_type=f32)

    x2 = x_ref[0]                                              # (C, H*W)

    # rfft2 as one dense real matrix per part, K = H*W.
    re = mm(x2, mfr_ref[...])                                  # (C, H*Wf)
    im = mm(x2, mfi_ref[...])                                  # (C, H*Wf)

    # 1x1 ConvLayer channel mix (trailing Conv2d folded in), 2-D weights only.
    pm = mm(w1l_ref[...], re) + mm(w1r_ref[...], im) + b1_ref[...]   # (2*OC, H*Wf)

    # irfft2 (+ crop/pad border pre-zeroed in the matrices), K = H*Wf,
    # then the output-conv bias (border positions correctly end up = b2).
    z = (mm(pm[:OC, :], mir_ref[...])
         + mm(pm[OC:, :], mii_ref[...]) + b2_ref[...])               # (OC, H*W)

    out_ref[...] = z.reshape(out_ref.shape).astype(out_ref.dtype)


# ----------------------------------------------------------------------------
# Host-side constants: Kronecker rfft2 / irfft2 matrices, parameter folding
# ----------------------------------------------------------------------------
def make_rfft2_matrices(H, W, dtype):
    """Dense real matrices realizing rfft2 / irfft2 (backward norm) exactly."""
    Wf = W // 2 + 1
    th_hu = 2.0 * np.pi * np.outer(np.arange(H), np.arange(H)) / H     # (H, H)
    th_wv = 2.0 * np.pi * np.outer(np.arange(W), np.arange(Wf)) / W    # (W, Wf)
    theta = th_hu[:, None, :, None] + th_wv[None, :, None, :]          # (h, w, u, v)

    # Forward:  X[u,v] = sum_{h,w} x[h,w] * exp(-i*theta)
    MFr = np.cos(theta).reshape(H * W, H * Wf)
    MFi = (-np.sin(theta)).reshape(H * W, H * Wf)

    # Inverse (irfft2, norm 1/(H*W)) with Hermitian weights g along the W axis:
    #   z[h,w] = (1/HW) sum_{u,v} g[v] * (P_re*cos(theta) - P_im*sin(theta))
    g = np.full((Wf,), 2.0)
    g[0] = 1.0
    if W % 2 == 0:
        g[-1] = 1.0
    scale = g / (H * W)
    MIr = (np.cos(theta) * scale).transpose(2, 3, 0, 1).reshape(H * Wf, H * W)
    MIi = (-np.sin(theta) * scale).transpose(2, 3, 0, 1).reshape(H * Wf, H * W)

    # Fold irfft2(...)[1:-1,1:-1] + Conv2d(padding=1): zero the border columns.
    for M in (MIr, MIi):
        M3 = M.reshape(H * Wf, H, W)
        M3[:, 0, :] = 0.0
        M3[:, -1, :] = 0.0
        M3[:, :, 0] = 0.0
        M3[:, :, -1] = 0.0

    return tuple(jnp.asarray(M, dtype=dtype) for M in (MFr, MFi, MIr, MIi))


def _pick_vmem_limit_bytes(C, OC, HW, HWf, mm_itemsize):
    """Block-footprint-derived scoped-VMEM limit, capped by the device VMEM."""
    const_b = (2 * HW * HWf + 2 * HWf * HW + 2 * 2 * OC * C) * mm_itemsize + 3 * OC * 4
    block_b = (C * HW + OC * HW) * 4
    inter_b = (2 * C * HWf + 2 * OC * HWf + 2 * OC * HW) * 4
    est = 2 * block_b + 2 * const_b + inter_b        # double-buffered blocks/consts
    try:
        cap = int(pltpu.get_tpu_info().vmem_capacity_bytes) * 3 // 4
    except Exception:                                # noqa: BLE001
        cap = 48 * 1024 * 1024                       # safe on v7x's 64 MiB VMEM
    return int(min(max(4 * est, 32 * 1024 * 1024), cap))


def fourier_conv_pallas(x, W1, b1, W2, b2, out_channels, *,
                        matmul_dtype=jnp.float32):
    """x: (B, C, H, W) f32.  W1: (2*OC, 2*C), b1: (2*OC,), W2: (OC, OC), b2: (OC,)."""
    B, C, H, W = x.shape
    OC = out_channels
    Wf = W // 2 + 1
    HW, HWf = H * W, H * Wf

    # Kronecker path only makes sense while the DFT matrices are VMEM-small.
    assert 4 * HW * HWf <= 8 * 1024 * 1024, "spatial size too large for Kronecker path"

    MFr, MFi, MIr, MIi = make_rfft2_matrices(H, W, matmul_dtype)

    # Fold the trailing Conv2d(OC, OC, 1) into the 1x1 ConvLayer mix weights
    # (both are channel-only linear maps -> they commute with the spatial ops).
    W1f = jnp.concatenate([W2 @ W1[:OC, :], W2 @ W1[OC:, :]], axis=0)   # (2*OC, 2*C)
    W1l = W1f[:, :C].astype(matmul_dtype)     # acts on Re input channels
    W1r = W1f[:, C:].astype(matmul_dtype)     # acts on Im input channels
    b1f = jnp.concatenate([W2 @ b1[:OC], W2 @ b1[OC:]]
                          ).reshape(2 * OC, 1).astype(jnp.float32)
    b2c = b2.reshape(OC, 1).astype(jnp.float32)

    x3 = x.reshape(B, C, HW)                  # lane-dense input (host-side, free)

    const = lambda shape: pl.BlockSpec(shape, lambda b: (0, 0))

    grid_spec = pltpu.PrefetchScalarGridSpec(
        num_scalar_prefetch=0,
        grid=(B,),                            # one image per step: max grid steps,
        in_specs=[                            # minimal per-step VMEM footprint.
            pl.BlockSpec((1, C, HW), lambda b: (b, 0, 0)),   # x
            const((HW, HWf)),     # MFr
            const((HW, HWf)),     # MFi
            const((HWf, HW)),     # MIr
            const((HWf, HW)),     # MIi
            const((2 * OC, C)),   # W1l
            const((2 * OC, C)),   # W1r
            const((2 * OC, 1)),   # b1f
            const((OC, 1)),       # b2
        ],
        out_specs=pl.BlockSpec((1, OC, HW), lambda b: (b, 0, 0)),
    )

    kernel = functools.partial(fourier_conv_kernel, mm_dtype=matmul_dtype)
    mm_itemsize = np.dtype(matmul_dtype).itemsize

    fn = pl.pallas_call(
        kernel,
        out_shape=jax.ShapeDtypeStruct((B, OC, HW), jnp.float32),
        grid_spec=grid_spec,
        compiler_params=pltpu.CompilerParams(
            dimension_semantics=("parallel",),
            vmem_limit_bytes=_pick_vmem_limit_bytes(C, OC, HW, HWf, mm_itemsize),
        ),
    )
    out = fn(x3, MFr, MFi, MIr, MIi, W1l, W1r, b1f, b2c)
    return out.reshape(B, OC, H, W)


# ----------------------------------------------------------------------------
# Pure-JAX reference (jnp.fft, unfused parameters) for the correctness check.
# ----------------------------------------------------------------------------
def fourier_conv_ref(x, W1, b1, W2, b2, out_channels):
    X = jnp.fft.rfft2(x, axes=(-2, -1))
    Xcat = jnp.concatenate([X.real, X.imag], axis=1)                   # (B, 2C, H, Wf)
    P = jnp.einsum("oc,bchv->bohv", W1, Xcat) + b1[None, :, None, None]
    Z = P[:, :out_channels] + 1j * P[:, out_channels:]
    z = jnp.fft.irfft2(Z, axes=(-2, -1))[..., 1:-1, 1:-1]
    zp = jnp.pad(z, ((0, 0), (0, 0), (1, 1), (1, 1)))                  # padding=1
    return jnp.einsum("oc,bchw->bohw", W2, zp) + b2[None, :, None, None]


# ----------------------------------------------------------------------------
# Main
# ----------------------------------------------------------------------------
if __name__ == "__main__":
    B, C, H, W = 2, 4, 16, 16
    OC = C  # out_channels defaults to in_channels

    key = jax.random.PRNGKey(0)
    kx, k1, k2, k3, k4 = jax.random.split(key, 5)

    x = jax.random.normal(kx, (B, C, H, W), dtype=jnp.float32)

    # ConvLayer(2C -> 2*OC, kernel 1) parameters (synthetic deterministic init).
    W1 = jax.random.normal(k1, (2 * OC, 2 * C), dtype=jnp.float32) / jnp.sqrt(2.0 * C)
    b1 = 0.1 * jax.random.normal(k2, (2 * OC,), dtype=jnp.float32)
    # nn.Conv2d(OC, OC, 1, padding=1) parameters.
    W2 = jax.random.normal(k3, (OC, OC), dtype=jnp.float32) / jnp.sqrt(float(OC))
    b2 = 0.1 * jax.random.normal(k4, (OC,), dtype=jnp.float32)

    run = jax.jit(functools.partial(fourier_conv_pallas, out_channels=OC))
    out = jax.block_until_ready(run(x, W1, b1, W2, b2))

    ref = fourier_conv_ref(x, W1, b1, W2, b2, OC)
    assert out.shape == (B, OC, H, W), out.shape
    max_err = float(jnp.max(jnp.abs(out - ref)))
    assert jnp.allclose(out, ref, atol=2e-3, rtol=2e-3), max_err

    print("KERNEL_OK")
</pallas_src>

<mosaic_0001>
module attributes {stable_mosaic.version = 11 : i64} {
  func.func @fourier_conv_kernel(%arg0: i32, %arg1: memref<1x4x256xf32, #tpu.memory_space<vmem>>, %arg2: memref<256x144xf32, #tpu.memory_space<vmem>>, %arg3: memref<256x144xf32, #tpu.memory_space<vmem>>, %arg4: memref<144x256xf32, #tpu.memory_space<vmem>>, %arg5: memref<144x256xf32, #tpu.memory_space<vmem>>, %arg6: memref<8x4xf32, #tpu.memory_space<vmem>>, %arg7: memref<8x4xf32, #tpu.memory_space<vmem>>, %arg8: memref<8x1xf32, #tpu.memory_space<vmem>>, %arg9: memref<4x1xf32, #tpu.memory_space<vmem>>, %arg10: memref<1x4x256xf32, #tpu.memory_space<vmem>>) attributes {dimension_semantics = [#tpu.dimension_semantics<parallel>], iteration_bounds = array<i64: 2>, scalar_prefetch = 0 : i64, scratch_operands = 0 : i64, tpu.core_type = #tpu.core_type<tc>, window_params = [{transform_indices = @transform_0, window_bounds = array<i64: 1, 4, 256>}, {pipeline_mode = #tpu.pipeline_mode<synchronous>, transform_indices = @transform_1, window_bounds = array<i64: 256, 144>}, {pipeline_mode = #tpu.pipeline_mode<synchronous>, transform_indices = @transform_2, window_bounds = array<i64: 256, 144>}, {pipeline_mode = #tpu.pipeline_mode<synchronous>, transform_indices = @transform_3, window_bounds = array<i64: 144, 256>}, {pipeline_mode = #tpu.pipeline_mode<synchronous>, transform_indices = @transform_4, window_bounds = array<i64: 144, 256>}, {pipeline_mode = #tpu.pipeline_mode<synchronous>, transform_indices = @transform_5, window_bounds = array<i64: 8, 4>}, {pipeline_mode = #tpu.pipeline_mode<synchronous>, transform_indices = @transform_6, window_bounds = array<i64: 8, 4>}, {pipeline_mode = #tpu.pipeline_mode<synchronous>, transform_indices = @transform_7, window_bounds = array<i64: 8, 1>}, {pipeline_mode = #tpu.pipeline_mode<synchronous>, transform_indices = @transform_8, window_bounds = array<i64: 4, 1>}, {transform_indices = @transform_9, window_bounds = array<i64: 1, 4, 256>}]} {
    %c0 = arith.constant 0 : index
    %c0_0 = arith.constant 0 : index
    %c0_1 = arith.constant 0 : index
    %0 = vector.load %arg1[%c0, %c0_0, %c0_1] : memref<1x4x256xf32, #tpu.memory_space<vmem>>, vector<1x4x256xf32>
    %1 = vector.shape_cast %0 : vector<1x4x256xf32> to vector<4x256xf32>
    %c0_2 = arith.constant 0 : index
    %c0_3 = arith.constant 0 : index
    %2 = vector.load %arg2[%c0_2, %c0_3] : memref<256x144xf32, #tpu.memory_space<vmem>>, vector<256x144xf32>
    %cst = arith.constant dense<0.000000e+00> : vector<4x144xf32>
    %3 = tpu.matmul %1, %2, %cst {dimension_numbers = #tpu.dot_dimension_numbers<[1], [0], [0], [1], [0, 0, 1, 1], [], []>} : vector<4x256xf32>, vector<256x144xf32>, vector<4x144xf32> -> vector<4x144xf32>
    %c0_4 = arith.constant 0 : index
    %c0_5 = arith.constant 0 : index
    %4 = vector.load %arg3[%c0_4, %c0_5] : memref<256x144xf32, #tpu.memory_space<vmem>>, vector<256x144xf32>
    %cst_6 = arith.constant dense<0.000000e+00> : vector<4x144xf32>
    %5 = tpu.matmul %1, %4, %cst_6 {dimension_numbers = #tpu.dot_dimension_numbers<[1], [0], [0], [1], [0, 0, 1, 1], [], []>} : vector<4x256xf32>, vector<256x144xf32>, vector<4x144xf32> -> vector<4x144xf32>
    %c0_7 = arith.constant 0 : index
    %c0_8 = arith.constant 0 : index
    %6 = vector.load %arg6[%c0_7, %c0_8] : memref<8x4xf32, #tpu.memory_space<vmem>>, vector<8x4xf32>
    %cst_9 = arith.constant dense<0.000000e+00> : vector<8x144xf32>
    %7 = tpu.matmul %6, %3, %cst_9 {dimension_numbers = #tpu.dot_dimension_numbers<[1], [0], [0], [1], [0, 0, 1, 1], [], []>} : vector<8x4xf32>, vector<4x144xf32>, vector<8x144xf32> -> vector<8x144xf32>
    %c0_10 = arith.constant 0 : index
    %c0_11 = arith.constant 0 : index
    %8 = vector.load %arg7[%c0_10, %c0_11] : memref<8x4xf32, #tpu.memory_space<vmem>>, vector<8x4xf32>
    %cst_12 = arith.constant dense<0.000000e+00> : vector<8x144xf32>
    %9 = tpu.matmul %8, %5, %cst_12 {dimension_numbers = #tpu.dot_dimension_numbers<[1], [0], [0], [1], [0, 0, 1, 1], [], []>} : vector<8x4xf32>, vector<4x144xf32>, vector<8x144xf32> -> vector<8x144xf32>
    %10 = arith.addf %7, %9 : vector<8x144xf32>
    %c0_13 = arith.constant 0 : index
    %c0_14 = arith.constant 0 : index
    %11 = vector.load %arg8[%c0_13, %c0_14] : memref<8x1xf32, #tpu.memory_space<vmem>>, vector<8x1xf32>
    %12 = vector.broadcast %11 : vector<8x1xf32> to vector<8x144xf32>
    %13 = arith.addf %10, %12 : vector<8x144xf32>
    %14 = vector.extract_strided_slice %13 {offsets = [0, 0], sizes = [4, 144], strides = [1, 1]} : vector<8x144xf32> to vector<4x144xf32>
    %c0_15 = arith.constant 0 : index
    %c0_16 = arith.constant 0 : index
    %15 = vector.load %arg4[%c0_15, %c0_16] : memref<144x256xf32, #tpu.memory_space<vmem>>, vector<144x256xf32>
    %cst_17 = arith.constant dense<0.000000e+00> : vector<4x256xf32>
    %16 = tpu.matmul %14, %15, %cst_17 {dimension_numbers = #tpu.dot_dimension_numbers<[1], [0], [0], [1], [0, 0, 1, 1], [], []>} : vector<4x144xf32>, vector<144x256xf32>, vector<4x256xf32> -> vector<4x256xf32>
    %17 = vector.extract_strided_slice %13 {offsets = [4, 0], sizes = [4, 144], strides = [1, 1]} : vector<8x144xf32> to vector<4x144xf32>
    %c0_18 = arith.constant 0 : index
    %c0_19 = arith.constant 0 : index
    %18 = vector.load %arg5[%c0_18, %c0_19] : memref<144x256xf32, #tpu.memory_space<vmem>>, vector<144x256xf32>
    %cst_20 = arith.constant dense<0.000000e+00> : vector<4x256xf32>
    %19 = tpu.matmul %17, %18, %cst_20 {dimension_numbers = #tpu.dot_dimension_numbers<[1], [0], [0], [1], [0, 0, 1, 1], [], []>} : vector<4x144xf32>, vector<144x256xf32>, vector<4x256xf32> -> vector<4x256xf32>
    %20 = arith.addf %16, %19 : vector<4x256xf32>
    %c0_21 = arith.constant 0 : index
    %c0_22 = arith.constant 0 : index
    %21 = vector.load %arg9[%c0_21, %c0_22] : memref<4x1xf32, #tpu.memory_space<vmem>>, vector<4x1xf32>
    %22 = vector.broadcast %21 : vector<4x1xf32> to vector<4x256xf32>
    %23 = arith.addf %20, %22 : vector<4x256xf32>
    %24 = vector.shape_cast %23 : vector<4x256xf32> to vector<1x4x256xf32>
    %c0_23 = arith.constant 0 : index
    %c0_24 = arith.constant 0 : index
    %c0_25 = arith.constant 0 : index
    %25 = vector.load %arg10[%c0_23, %c0_24, %c0_25] : memref<1x4x256xf32, #tpu.memory_space<vmem>>, vector<1x4x256xf32>
    tpu.vector_store %arg10[%c0_23, %c0_24, %c0_25], %24 {strides = array<i32>} : memref<1x4x256xf32, #tpu.memory_space<vmem>>, vector<1x4x256xf32>,
    return
  }
  func.func @transform_0(%arg0: i32) -> (i32, i32, i32) {
    %c0_i32 = arith.constant 0 : i32
    %c0_i32_0 = arith.constant 0 : i32
    %c0_i32_1 = arith.constant 0 : i32
    return %arg0, %c0_i32, %c0_i32_0 : i32, i32, i32
  }
  func.func @transform_1(%arg0: i32) -> (i32, i32) {
    %c0_i32 = arith.constant 0 : i32
    %c0_i32_0 = arith.constant 0 : i32
    %c0_i32_1 = arith.constant 0 : i32
    return %c0_i32, %c0_i32_0 : i32, i32
  }
  func.func @transform_2(%arg0: i32) -> (i32, i32) {
    %c0_i32 = arith.constant 0 : i32
    %c0_i32_0 = arith.constant 0 : i32
    %c0_i32_1 = arith.constant 0 : i32
    return %c0_i32, %c0_i32_0 : i32, i32
  }
  func.func @transform_3(%arg0: i32) -> (i32, i32) {
    %c0_i32 = arith.constant 0 : i32
    %c0_i32_0 = arith.constant 0 : i32
    %c0_i32_1 = arith.constant 0 : i32
    return %c0_i32, %c0_i32_0 : i32, i32
  }
  func.func @transform_4(%arg0: i32) -> (i32, i32) {
    %c0_i32 = arith.constant 0 : i32
    %c0_i32_0 = arith.constant 0 : i32
    %c0_i32_1 = arith.constant 0 : i32
    return %c0_i32, %c0_i32_0 : i32, i32
  }
  func.func @transform_5(%arg0: i32) -> (i32, i32) {
    %c0_i32 = arith.constant 0 : i32
    %c0_i32_0 = arith.constant 0 : i32
    %c0_i32_1 = arith.constant 0 : i32
    return %c0_i32, %c0_i32_0 : i32, i32
  }
  func.func @transform_6(%arg0: i32) -> (i32, i32) {
    %c0_i32 = arith.constant 0 : i32
    %c0_i32_0 = arith.constant 0 : i32
    %c0_i32_1 = arith.constant 0 : i32
    return %c0_i32, %c0_i32_0 : i32, i32
  }
  func.func @transform_7(%arg0: i32) -> (i32, i32) {
    %c0_i32 = arith.constant 0 : i32
    %c0_i32_0 = arith.constant 0 : i32
    %c0_i32_1 = arith.constant 0 : i32
    return %c0_i32, %c0_i32_0 : i32, i32
  }
  func.func @transform_8(%arg0: i32) -> (i32, i32) {
    %c0_i32 = arith.constant 0 : i32
    %c0_i32_0 = arith.constant 0 : i32
    %c0_i32_1 = arith.constant 0 : i32
    return %c0_i32, %c0_i32_0 : i32, i32
  }
  func.func @transform_9(%arg0: i32) -> (i32, i32, i32) {
    %c0_i32 = arith.constant 0 : i32
    %c0_i32_0 = arith.constant 0 : i32
    %c0_i32_1 = arith.constant 0 : i32
    return %arg0, %c0_i32, %c0_i32_0 : i32, i32, i32
  }
}

</mosaic_0001>

<bundles_post_ra>
// kernel: fourier_conv_pallas.1
= control target key start
LH: loop header
LB: loop body
LE: loop exit
PB: predicated region body
PF: predicated region fallthrough
CT: control target
= control target key end

     0   :  { %14 = vsyncpa [#allocation3], 0  ;;  %s1847_s0 = inlined_call_operand.vmem [shape: f32[2,4,256], index: 0, kind: input, shape index: {}]   ;;  %s1848_s1 = inlined_call_operand.hbm [shape: f32[256,144], index: 1, kind: input, shape index: {}]   ;;  %s1849_s2 = inlined_call_operand.hbm [shape: f32[256,144], index: 2, kind: input, shape index: {}]   ;;  %s1850_s3 = inlined_call_operand.hbm [shape: f32[144,256], index: 3, kind: input, shape index: {}]   ;;  %s1851_s4 = inlined_call_operand.vmem [shape: f32[144,256], index: 4, kind: input, shape index: {}]   ;;  %s1852_s5 = inlined_call_operand.vmem [shape: f32[8,4], index: 5, kind: input, shape index: {}]   ;;  %s1853_s6 = inlined_call_operand.vmem [shape: f32[8,4], index: 6, kind: input, shape index: {}]   ;;  %s1854_s7 = inlined_call_operand.vmem [shape: f32[8,1], index: 7, kind: input, shape index: {}]   ;;  %s1855_s8 = inlined_call_operand.vmem [shape: f32[4,1], index: 8, kind: input, shape index: {}]   ;;  %s1856_s9 = inlined_call_operand.vmem [shape: f32[2,4,256], index: 9, kind: output, shape index: {}]  }
   0x1   :  { %15 = vsyncpa [#allocation5], 0  ;;  %s1579_s30 = smov 0  }
   0x2 LB: > { %s1585_s10 = sadd.s32 4294967295, %s1520_s30   ;;  %p1148_p0 = scmp.ge.s32.totalorder %s1520_s30, 1  ;;  %s1520_s30 = sphi %s1579_s30, %s21_s30  }
   0x3   : > { %p246_p1 = scmp.lt.s32.totalorder %s1520_s30, 3  ;;  %p1857_p2 = scmp.eq.s32.totalorder %s1585_s10, 0 }
   0x4   : > { %s1522_s12 = smov [#allocation4]   ;;  %s1523_s14 = smov [#allocation2]  }
   0x5   : > { %p1590_p3 = pnand %p1148_p0, %p246_p1  ;;  %s271_s13 = sshll.u32 %s1522_s12, 4  ;;  %s272_s13 = int_to_ptr.vmem [resolvable:$true] %s271_s13 }
   0x6   : > { %s258_s15 = sshll.u32 %s1523_s14, 4  ;;  %s1524_s17 = smov [#allocation6]   ;;  %s1602_s15 = int_to_ptr.vmem [resolvable:$true] %s258_s15 }
   0x7   : > { %s1859_s11 = scalar_select %p1590_p3, 1, 0 }
   0x8   : > { %p1389_p4 = pneg %p1590_p3  ;;  %s284_s18 = sshll.u32 %s1524_s17, 4  ;;  %s1604_s18 = int_to_ptr.vmem [resolvable:$true] %s284_s18 }
   0x9   : > { %s1422_s21 = scalar_lea.hbm %s1849_s2, 8192 }
   0xa   : > { %p1598_p5 = pnand %p1857_p2, %p1389_p4  ;;  %p1423_p6 = scmp.ne.s32.totalorder %s1849_s2, %s1422_s21 }
   0xb   : > { %p1429_p10 = scmp.lt.u32.totalorder %s1422_s21, %s1849_s2 }
   0xc   : > { %p1614_p7 = pneg %p1598_p5 }
   0xe   : > { %p1425_p8 = pnand %p1614_p7, %p1423_p6 }
  0x10   : > { %p1426_p9 = pneg %p1425_p8 }
  0x12   : > { %p1431_p11 = pnand %p1429_p10, %p1426_p9 }
  0x14   : > { %1434 = shalt.err (!%p1431_p11)
}
  0x15   : > { %s1435_s27 = scalar_lea.vmem %s272_s13, 8192  ;;  %p1443_p1 = scmp.lt.s32.totalorder %s272_s13, %s272_s13 }
  0x16   : > { %p1436_p12 = scmp.ne.s32.totalorder %s272_s13, %s1435_s27  ;;  %p1444_p4 = scmp.lt.s32.totalorder %s1435_s27, %s1435_s27 }
  0x18   : > { %p1438_p13 = pnand %p1436_p12, %p1614_p7  ;;  %p1445_p2 = por %p1444_p4, %p1443_p1 }
  0x1a   : > { %p1439_p0 = pneg %p1438_p13 }
  0x1c   : > { %p1446_p3 = pnand %p1445_p2, %p1439_p0 }
  0x1e   : > { %1449 = shalt.err (!%p1446_p3)
}
  0x1f   : > { %s1525_s28 = smov 256   ;;  %s1526_s29 = smov 16  }
  0x20   : > { %1395 = dma.hbm_to_vmem [thread:$0]  (!%p1598_p5), %s1849_s2, 8192, %s272_s13, [#allocation5], %s1525_s28, %s1525_s28, %s1526_s29  }
  0x21   : > { %s1450_s20 = scalar_lea.hbm %s1848_s1, 8192 }
  0x22   : > { %p1451_p2 = scmp.ne.s32.totalorder %s1848_s1, %s1450_s20  ;;  %p1457_p8 = scmp.lt.u32.totalorder %s1450_s20, %s1848_s1 }
  0x24   : > { %p1453_p3 = pnand %p1451_p2, %p1614_p7 }
  0x26   : > { %p1454_p6 = pneg %p1453_p3 }
  0x28   : > { %p1459_p9 = pnand %p1457_p8, %p1454_p6 }
  0x2a   : > { %1462 = shalt.err (!%p1459_p9)
}
  0x2b   : > { %s1463_s13 = scalar_lea.vmem %s1602_s15, 8192  ;;  %p1471_p13 = scmp.lt.s32.totalorder %s1602_s15, %s1602_s15 }
  0x2c   : > { %p1464_p10 = scmp.ne.s32.totalorder %s1602_s15, %s1463_s13  ;;  %p1472_p0 = scmp.lt.s32.totalorder %s1463_s13, %s1463_s13 }
  0x2e   : > { %p1466_p11 = pnand %p1464_p10, %p1614_p7  ;;  %p1473_p1 = por %p1472_p0, %p1471_p13 }
  0x30   : > { %p1467_p12 = pneg %p1466_p11 }
  0x32   : > { %p1474_p4 = pnand %p1473_p1, %p1467_p12 }
  0x34   : > { %1477 = shalt.err (!%p1474_p4)
}
  0x35   : > { %1392 = dma.hbm_to_vmem [thread:$0]  (!%p1598_p5), %s1848_s1, 8192, %s1602_s15, [#allocation3], %s1525_s28, %s1525_s28, %s1526_s29  }
  0x36   : > { %s1478_s17 = scalar_lea.hbm %s1850_s3, 4608 }
  0x37   : > { %p1479_p2 = scmp.ne.s32.totalorder %s1850_s3, %s1478_s17  ;;  %p1485_p8 = scmp.lt.u32.totalorder %s1478_s17, %s1850_s3 }
  0x39   : > { %p1481_p3 = pnand %p1479_p2, %p1614_p7 }
  0x3b   : > { %p1482_p6 = pneg %p1481_p3 }
  0x3d   : > { %p1487_p9 = pnand %p1485_p8, %p1482_p6 }
  0x3f   : > { %1490 = shalt.err (!%p1487_p9)
}
  0x40   : > { %s1491_s15 = scalar_lea.vmem %s1604_s18, 4608  ;;  %p1499_p13 = scmp.lt.s32.totalorder %s1604_s18, %s1604_s18 }
  0x41   : > { %p1492_p10 = scmp.ne.s32.totalorder %s1604_s18, %s1491_s15  ;;  %p1500_p0 = scmp.lt.s32.totalorder %s1491_s15, %s1491_s15 }
  0x43   : > { %p1494_p11 = pnand %p1492_p10, %p1614_p7  ;;  %p1501_p1 = por %p1500_p0, %p1499_p13 }
  0x45   : > { %p1495_p12 = pneg %p1494_p11 }
  0x47   : > { %p1502_p4 = pnand %p1501_p1, %p1495_p12 }
  0x49   : > { %1505 = shalt.err (!%p1502_p4)
}
  0x4a   : > { %1398 = dma.hbm_to_vmem [thread:$0]  (!%p1598_p5), %s1850_s3, 4608, %s1604_s18, [#allocation5], %s1525_s28, %s1525_s28, %s1526_s29  }
  0x4b   : > { %p1862_p2 = scmp.ne.s32.totalorder %s1859_s11, 0 }
  0x4c   : > { %p1863_p7 = scmp.eq.s32.totalorder (!%p1862_p2), %s1585_s10, 0 }
  0x4d   : > { %323 = sbr.rel (%p1862_p2) target bundleno = 813 (0x32d), region = 56 }
  0x54   : > { %1511 = dma.done.wait (%p1863_p7), [#allocation3], 8192   ;;  %p1864_p3 = pmov %p1863_p7 }
  0x56   : > { %1513 = vsyncadd (%p1864_p3), [#allocation3], 4294959104  ;;  %p1865_p6 = pmov %p1864_p3 }
  0x57   : > { %p1866_p8 = pmov %p1864_p3 }
  0x58   : > { %1515 = dma.done.wait (%p1865_p6), [#allocation5], 12800  }
  0x59   : > { %1517 = vsyncadd (%p1866_p8), [#allocation5], 4294954496  ;;  %v379_v0 = vld [vmem:[#allocation2 + $0x8] sm:$0xff]  ;;  %v381_v1 = vld [vmem:[#allocation2 + $0x18] sm:$0xff]  ;;  %p367_p5 = scmp.lt.s32.totalorder %s1585_s10, 1  ;;  %vm657_vm0 = vcmask 1043456  }
  0x5a   : > { %v517_v2 = vld [vmem:[#allocation4 + $0x8] sm:$0xff]  ;;  %v1173_v3 = vpack.c.bf16 %v381_v1, %v379_v0  ;;  %v519_v4 = vld [vmem:[#allocation4 + $0x18] sm:$0xff]  ;;  %v378_v5 = vld [vmem:[#allocation2] sm:$0xff]  ;;  %vm653_vm1 = vcmask 31744   ;;  %vm900_vm2 = vcmask 130048  }
  0x5b   : > { %v380_v6 = vld [vmem:[#allocation2 + $0x10] sm:$0xff]  ;;  %v1237_v7 = vpack.c.bf16 %v519_v4, %v517_v2  ;;  %v516_v9 = vld [vmem:[#allocation4] sm:$0xff]  ;;  %v383_v11 = vld [vmem:[#allocation2 + $0x28] sm:$0xff]  ;;  %s1868_s10 = smov (!%p367_p5, %s1585_s10), 1 }
  0x5c   : > { %v1175_v8 = vpack.c.bf16 %v380_v6, %v378_v5  ;;  %v518_v10 = vld [vmem:[#allocation4 + $0x10] sm:$0xff]  ;;  %1174 = vmatprep.subr.bf16.mxu0 %v1173_v3  ;;  %v385_v13 = vld [vmem:[#allocation2 + $0x38] sm:$0xff]  ;;  %v521_v14 = vld [vmem:[#allocation4 + $0x28] sm:$0xff]  ;;  %s1171_s11 = sshll.u32 %s1868_s10, 3 }
  0x5d   : > { %v1239_v12 = vpack.c.bf16 %v518_v10, %v516_v9  ;;  %v523_v15 = vld [vmem:[#allocation4 + $0x38] sm:$0xff]  ;;  %1238 = vmatprep.subr.bf16.mxu1 %v1237_v7  ;;  %v1177_v16 = vpack.c.bf16 %v385_v13, %v383_v11  ;;  %v382_v18 = vld [vmem:[#allocation2 + $0x20] sm:$0xff]  ;;  %v384_v19 = vld [vmem:[#allocation2 + $0x30] sm:$0xff]  ;;  %s371_s24 = scalar_lea.vmem %s1847_s0, %s1171_s11  ;;  %s376_s21 = scalar_lea.vmem %s1856_s9, %s1171_s11 }
  0x5e   : > { %1176 = vmatpush1.bf16.msra.mxu0 %v1175_v8  ;;  %v1241_v17 = vpack.c.bf16 %v523_v15, %v521_v14  ;;  %v520_v20 = vld [vmem:[#allocation4 + $0x20] sm:$0xff]  ;;  %v1179_v21 = vpack.c.bf16 %v384_v19, %v382_v18  ;;  %v522_v22 = vld [vmem:[#allocation4 + $0x30] sm:$0xff]  ;;  %v387_v23 = vld [vmem:[#allocation2 + $0x48] sm:$0xff] }
  0x5f   : > { %1240 = vmatpush1.bf16.msra.mxu1 %v1239_v12  ;;  %v389_v24 = vld [vmem:[#allocation2 + $0x58] sm:$0xff]  ;;  %1178 = vmatprep.subr.bf16.mxu0 %v1177_v16  ;;  %v1243_v25 = vpack.c.bf16 %v522_v22, %v520_v20  ;;  %v525_v27 = vld [vmem:[#allocation4 + $0x48] sm:$0xff]  ;;  %v386_v29 = vld [vmem:[#allocation2 + $0x40] sm:$0xff] }
  0x60   : > { %1242 = vmatprep.subr.bf16.mxu1 %v1241_v17  ;;  %v1181_v26 = vpack.c.bf16 %v389_v24, %v387_v23  ;;  %v527_v28 = vld [vmem:[#allocation4 + $0x58] sm:$0xff]  ;;  %v388_v31 = vld [vmem:[#allocation2 + $0x50] sm:$0xff]  ;;  %v524_v32 = vld [vmem:[#allocation4 + $0x40] sm:$0xff] }
  0x61   : > { %v1245_v30 = vpack.c.bf16 %v527_v28, %v525_v27  ;;  %v526_v33 = vld [vmem:[#allocation4 + $0x50] sm:$0xff]  ;;  %v1183_v34 = vpack.c.bf16 %v388_v31, %v386_v29  ;;  %v391_v35 = vld [vmem:[#allocation2 + $0x68] sm:$0xff]  ;;  %v393_v36 = vld [vmem:[#allocation2 + $0x78] sm:$0xff] }
  0x62   : > { %1180 = vmatpush1.bf16.msra.mxu0 %v1179_v21  ;;  %v529_v37 = vld [vmem:[#allocation4 + $0x68] sm:$0xff]  ;;  %v1247_v38 = vpack.c.bf16 %v526_v33, %v524_v32  ;;  %v1185_v39 = vpack.c.bf16 %v393_v36, %v391_v35  ;;  %v531_v40 = vld [vmem:[#allocation4 + $0x78] sm:$0xff]  ;;  %v390_v41 = vld [vmem:[#allocation2 + $0x60] sm:$0xff] }
  0x63   : > { %1244 = vmatpush1.bf16.msra.mxu1 %v1243_v25  ;;  %1182 = vmatprep.subr.bf16.mxu0 %v1181_v26  ;;  %v392_v42 = vld [vmem:[#allocation2 + $0x70] sm:$0xff]  ;;  %v1249_v43 = vpack.c.bf16 %v531_v40, %v529_v37  ;;  %v528_v44 = vld [vmem:[#allocation4 + $0x60] sm:$0xff]  ;;  %v395_v46 = vld [vmem:[#allocation2 + $0x88] sm:$0xff] }
  0x64   : > { %1246 = vmatprep.subr.bf16.mxu1 %v1245_v30  ;;  %v530_v45 = vld [vmem:[#allocation4 + $0x70] sm:$0xff]  ;;  %v397_v47 = vld [vmem:[#allocation2 + $0x98] sm:$0xff]  ;;  %v533_v48 = vld [vmem:[#allocation4 + $0x88] sm:$0xff]  ;;  %v1187_v50 = vpack.c.bf16 %v392_v42, %v390_v41 }
  0x65   : > { %v535_v49 = vld [vmem:[#allocation4 + $0x98] sm:$0xff]  ;;  %v1251_v51 = vpack.c.bf16 %v530_v45, %v528_v44  ;;  %v1189_v52 = vpack.c.bf16 %v397_v47, %v395_v46  ;;  %v394_v53 = vld [vmem:[#allocation2 + $0x80] sm:$0xff]  ;;  %v396_v54 = vld [vmem:[#allocation2 + $0x90] sm:$0xff] }
  0x66   : > { %1184 = vmatpush1.bf16.msra.mxu0 %v1183_v34  ;;  %v532_v55 = vld [vmem:[#allocation4 + $0x80] sm:$0xff]  ;;  %v1253_v56 = vpack.c.bf16 %v535_v49, %v533_v48  ;;  %v534_v57 = vld [vmem:[#allocation4 + $0x90] sm:$0xff]  ;;  %v399_v58 = vld [vmem:[#allocation2 + $0xa8] sm:$0xff]  ;;  %v1191_v62 = vpack.c.bf16 %v396_v54, %v394_v53 }
  0x67   : > { %1248 = vmatpush1.bf16.msra.mxu1 %v1247_v38  ;;  %1186 = vmatprep.subr.bf16.mxu0 %v1185_v39  ;;  %v401_v59 = vld [vmem:[#allocation2 + $0xb8] sm:$0xff]  ;;  %v537_v60 = vld [vmem:[#allocation4 + $0xa8] sm:$0xff]  ;;  %v1255_v63 = vpack.c.bf16 %v534_v57, %v532_v55  ;;  %v398_v1 = vld [vmem:[#allocation2 + $0xa0] sm:$0xff] }
  0x68   : > { %1250 = vmatprep.subr.bf16.mxu1 %v1249_v43  ;;  %v539_v61 = vld [vmem:[#allocation4 + $0xb8] sm:$0xff]  ;;  %v1193_v0 = vpack.c.bf16 %v401_v59, %v399_v58  ;;  %v400_v2 = vld [vmem:[#allocation2 + $0xb0] sm:$0xff]  ;;  %v536_v3 = vld [vmem:[#allocation4 + $0xa0] sm:$0xff] }
  0x69   : > { %v1257_v4 = vpack.c.bf16 %v539_v61, %v537_v60  ;;  %v538_v5 = vld [vmem:[#allocation4 + $0xb0] sm:$0xff]  ;;  %v403_v6 = vld [vmem:[#allocation2 + $0xc8] sm:$0xff]  ;;  %v405_v7 = vld [vmem:[#allocation2 + $0xd8] sm:$0xff]  ;;  %v1195_v10 = vpack.c.bf16 %v400_v2, %v398_v1 }
  0x6a   : > { %1188 = vmatpush1.bf16.msra.mxu0 %v1187_v50  ;;  %v541_v8 = vld [vmem:[#allocation4 + $0xc8] sm:$0xff]  ;;  %v543_v9 = vld [vmem:[#allocation4 + $0xd8] sm:$0xff]  ;;  %v1259_v11 = vpack.c.bf16 %v538_v5, %v536_v3  ;;  %v1197_v12 = vpack.c.bf16 %v405_v7, %v403_v6  ;;  %v402_v13 = vld [vmem:[#allocation2 + $0xc0] sm:$0xff] }
  0x6b   : > { %1252 = vmatpush1.bf16.msra.mxu1 %v1251_v51  ;;  %1190 = vmatprep.subr.bf16.mxu0 %v1189_v52  ;;  %v404_v14 = vld [vmem:[#allocation2 + $0xd0] sm:$0xff]  ;;  %v540_v15 = vld [vmem:[#allocation4 + $0xc0] sm:$0xff]  ;;  %v1261_v16 = vpack.c.bf16 %v543_v9, %v541_v8  ;;  %v407_v18 = vld [vmem:[#allocation2 + $0xe8] sm:$0xff] }
  0x6c   : > { %1254 = vmatprep.subr.bf16.mxu1 %v1253_v56  ;;  %v542_v17 = vld [vmem:[#allocation4 + $0xd0] sm:$0xff]  ;;  %v409_v19 = vld [vmem:[#allocation2 + $0xf8] sm:$0xff]  ;;  %v545_v20 = vld [vmem:[#allocation4 + $0xe8] sm:$0xff]  ;;  %v1199_v22 = vpack.c.bf16 %v404_v14, %v402_v13 }
  0x6d   : > { %v547_v21 = vld [vmem:[#allocation4 + $0xf8] sm:$0xff]  ;;  %v1263_v23 = vpack.c.bf16 %v542_v17, %v540_v15  ;;  %v1201_v24 = vpack.c.bf16 %v409_v19, %v407_v18  ;;  %v406_v25 = vld [vmem:[#allocation2 + $0xe0] sm:$0xff]  ;;  %v408_v26 = vld [vmem:[#allocation2 + $0xf0] sm:$0xff] }
  0x6e   : > { %1192 = vmatpush1.bf16.msra.mxu0 %v1191_v62  ;;  %v544_v27 = vld [vmem:[#allocation4 + $0xe0] sm:$0xff]  ;;  %v1265_v28 = vpack.c.bf16 %v547_v21, %v545_v20  ;;  %v546_v29 = vld [vmem:[#allocation4 + $0xf0] sm:$0xff]  ;;  %v411_v30 = vld [vmem:[#allocation2 + $0x108] sm:$0xff]  ;;  %v1203_v34 = vpack.c.bf16 %v408_v26, %v406_v25 }
  0x6f   : > { %1256 = vmatpush1.bf16.msra.mxu1 %v1255_v63  ;;  %1194 = vmatprep.subr.bf16.mxu0 %v1193_v0  ;;  %v413_v31 = vld [vmem:[#allocation2 + $0x118] sm:$0xff]  ;;  %v549_v32 = vld [vmem:[#allocation4 + $0x108] sm:$0xff]  ;;  %v1267_v35 = vpack.c.bf16 %v546_v29, %v544_v27  ;;  %v410_v37 = vld [vmem:[#allocation2 + $0x100] sm:$0xff] }
  0x70   : > { %1258 = vmatprep.subr.bf16.mxu1 %v1257_v4  ;;  %v551_v33 = vld [vmem:[#allocation4 + $0x118] sm:$0xff]  ;;  %v1205_v36 = vpack.c.bf16 %v413_v31, %v411_v30  ;;  %v412_v38 = vld [vmem:[#allocation2 + $0x110] sm:$0xff]  ;;  %v548_v39 = vld [vmem:[#allocation4 + $0x100] sm:$0xff] }
  0x71   : > { %v1269_v40 = vpack.c.bf16 %v551_v33, %v549_v32  ;;  %v550_v41 = vld [vmem:[#allocation4 + $0x110] sm:$0xff]  ;;  %v415_v42 = vld [vmem:[#allocation2 + $0x128] sm:$0xff]  ;;  %v417_v43 = vld [vmem:[#allocation2 + $0x138] sm:$0xff]  ;;  %v1207_v46 = vpack.c.bf16 %v412_v38, %v410_v37 }
  0x72   : > { %1196 = vmatpush1.bf16.msra.mxu0 %v1195_v10  ;;  %v553_v44 = vld [vmem:[#allocation4 + $0x128] sm:$0xff]  ;;  %v555_v45 = vld [vmem:[#allocation4 + $0x138] sm:$0xff]  ;;  %v1271_v47 = vpack.c.bf16 %v550_v41, %v548_v39  ;;  %v1209_v48 = vpack.c.bf16 %v417_v43, %v415_v42  ;;  %v414_v49 = vld [vmem:[#allocation2 + $0x120] sm:$0xff] }
  0x73   : > { %1260 = vmatpush1.bf16.msra.mxu1 %v1259_v11  ;;  %1198 = vmatprep.subr.bf16.mxu0 %v1197_v12  ;;  %v416_v50 = vld [vmem:[#allocation2 + $0x130] sm:$0xff]  ;;  %v552_v51 = vld [vmem:[#allocation4 + $0x120] sm:$0xff]  ;;  %v1273_v52 = vpack.c.bf16 %v555_v45, %v553_v44  ;;  %v419_v54 = vld [vmem:[#allocation2 + $0x148] sm:$0xff] }
  0x74   : > { %1262 = vmatprep.subr.bf16.mxu1 %v1261_v16  ;;  %v554_v53 = vld [vmem:[#allocation4 + $0x130] sm:$0xff]  ;;  %v421_v55 = vld [vmem:[#allocation2 + $0x158] sm:$0xff]  ;;  %v557_v56 = vld [vmem:[#allocation4 + $0x148] sm:$0xff]  ;;  %v1211_v58 = vpack.c.bf16 %v416_v50, %v414_v49 }
  0x75   : > { %v559_v57 = vld [vmem:[#allocation4 + $0x158] sm:$0xff]  ;;  %v1275_v59 = vpack.c.bf16 %v554_v53, %v552_v51  ;;  %v1213_v60 = vpack.c.bf16 %v421_v55, %v419_v54  ;;  %v418_v61 = vld [vmem:[#allocation2 + $0x140] sm:$0xff]  ;;  %v420_v62 = vld [vmem:[#allocation2 + $0x150] sm:$0xff] }
  0x76   : > { %1200 = vmatpush1.bf16.msra.mxu0 %v1199_v22  ;;  %v556_v63 = vld [vmem:[#allocation4 + $0x140] sm:$0xff]  ;;  %v1277_v0 = vpack.c.bf16 %v559_v57, %v557_v56  ;;  %v558_v1 = vld [vmem:[#allocation4 + $0x150] sm:$0xff]  ;;  %v423_v2 = vld [vmem:[#allocation2 + $0x168] sm:$0xff]  ;;  %v1215_v6 = vpack.c.bf16 %v420_v62, %v418_v61 }
  0x77   : > { %1264 = vmatpush1.bf16.msra.mxu1 %v1263_v23  ;;  %1202 = vmatprep.subr.bf16.mxu0 %v1201_v24  ;;  %v425_v3 = vld [vmem:[#allocation2 + $0x178] sm:$0xff]  ;;  %v561_v4 = vld [vmem:[#allocation4 + $0x168] sm:$0xff]  ;;  %v422_v7 = vld [vmem:[#allocation2 + $0x160] sm:$0xff]  ;;  %v1279_v8 = vpack.c.bf16 %v558_v1, %v556_v63 }
  0x78   : > { %1266 = vmatprep.subr.bf16.mxu1 %v1265_v28  ;;  %v563_v5 = vld [vmem:[#allocation4 + $0x178] sm:$0xff]  ;;  %v1217_v9 = vpack.c.bf16 %v425_v3, %v423_v2  ;;  %v424_v10 = vld [vmem:[#allocation2 + $0x170] sm:$0xff]  ;;  %v560_v11 = vld [vmem:[#allocation4 + $0x160] sm:$0xff]  ;;  %v1527_v2 = vmov 0.0  }
  0x79   : > { %v562_v12 = vld [vmem:[#allocation4 + $0x170] sm:$0xff]  ;;  %v1281_v13 = vpack.c.bf16 %v563_v5, %v561_v4  ;;  %v427_v14 = vld [vmem:[#allocation2 + $0x188] sm:$0xff]  ;;  %v429_v15 = vld [vmem:[#allocation2 + $0x198] sm:$0xff]  ;;  %v1219_v20 = vpack.c.bf16 %v424_v10, %v422_v7  ;;  %v1528_v4 = vmov 0  }
  0x7a   : > { %1204 = vmatpush1.bf16.msra.mxu0 %v1203_v34  ;;  %v1707_v16 = vld [vmem:[%s371_s24] sm:$0xff]  ;;  %v565_v17 = vld [vmem:[#allocation4 + $0x188] sm:$0xff]  ;;  %v567_v18 = vld [vmem:[#allocation4 + $0x198] sm:$0xff]  ;;  %v1283_v21 = vpack.c.bf16 %v562_v12, %v560_v11  ;;  %v1221_v22 = vpack.c.bf16 %v429_v15, %v427_v14  ;;  %1420 = vset.pattern.permute.xlu0 %v1528_v4 }
  0x7b   : > { %1268 = vmatpush1.bf16.msra.mxu1 %v1267_v35  ;;  %1206 = vmatprep.subr.bf16.mxu0 %v1205_v36  ;;  %v443_v19 = vcombine.high %v1707_v16, %v1707_v16  ;;  %v426_v23 = vld [vmem:[#allocation2 + $0x180] sm:$0xff]  ;;  %v428_v24 = vld [vmem:[#allocation2 + $0x190] sm:$0xff]  ;;  %v1285_v26 = vpack.c.bf16 %v567_v18, %v565_v17  ;;  %v431_v28 = vld [vmem:[#allocation2 + $0x1a8] sm:$0xff] }
  0x7c   : > { %1270 = vmatprep.subr.bf16.mxu1 %v1269_v40  ;;  %v564_v25 = vld [vmem:[#allocation4 + $0x180] sm:$0xff]  ;;  %v566_v27 = vld [vmem:[#allocation4 + $0x190] sm:$0xff]  ;;  %v433_v29 = vld [vmem:[#allocation2 + $0x1b8] sm:$0xff]  ;;  %v1223_v32 = vpack.c.bf16 %v428_v24, %v426_v23 }
  0x7d   : > { %509 = vmatprep.mubr.f32.mxu0 %v443_v19  ;;  %v569_v30 = vld [vmem:[#allocation4 + $0x1a8] sm:$0xff]  ;;  %v571_v31 = vld [vmem:[#allocation4 + $0x1b8] sm:$0xff]  ;;  %644 = vmatprep.mubr.f32.mxu1 %v443_v19  ;;  %v1287_v33 = vpack.c.bf16 %v566_v27, %v564_v25  ;;  %v1225_v34 = vpack.c.bf16 %v433_v29, %v431_v28  ;;  %v430_v35 = vld [vmem:[#allocation2 + $0x1a0] sm:$0xff] }
  0x7e   : > { %1208 = vmatpush1.bf16.msra.mxu0 %v1207_v46  ;;  %v432_v36 = vld [vmem:[#allocation2 + $0x1b0] sm:$0xff]  ;;  %v568_v37 = vld [vmem:[#allocation4 + $0x1a0] sm:$0xff]  ;;  %v1289_v38 = vpack.c.bf16 %v571_v31, %v569_v30  ;;  %v435_v40 = vld [vmem:[#allocation2 + $0x1c8] sm:$0xff] }
  0x7f   : > { %1272 = vmatpush1.bf16.msra.mxu1 %v1271_v47  ;;  %1210 = vmatprep.subr.bf16.mxu0 %v1209_v48  ;;  %v570_v39 = vld [vmem:[#allocation4 + $0x1b0] sm:$0xff]  ;;  %v437_v41 = vld [vmem:[#allocation2 + $0x1d8] sm:$0xff]  ;;  %v573_v42 = vld [vmem:[#allocation4 + $0x1c8] sm:$0xff]  ;;  %v1227_v44 = vpack.c.bf16 %v432_v36, %v430_v35 }
  0x80   : > { %1274 = vmatprep.subr.bf16.mxu1 %v1273_v52  ;;  %v575_v43 = vld [vmem:[#allocation4 + $0x1d8] sm:$0xff]  ;;  %v1291_v45 = vpack.c.bf16 %v570_v39, %v568_v37  ;;  %v1229_v46 = vpack.c.bf16 %v437_v41, %v435_v40  ;;  %v434_v47 = vld [vmem:[#allocation2 + $0x1c0] sm:$0xff]  ;;  %v436_v48 = vld [vmem:[#allocation2 + $0x1d0] sm:$0xff] }
  0x81   : > { %v572_v49 = vld [vmem:[#allocation4 + $0x1c0] sm:$0xff]  ;;  %v1293_v50 = vpack.c.bf16 %v575_v43, %v573_v42  ;;  %v574_v51 = vld [vmem:[#allocation4 + $0x1d0] sm:$0xff]  ;;  %v439_v52 = vld [vmem:[#allocation2 + $0x1e8] sm:$0xff]  ;;  %v1231_v56 = vpack.c.bf16 %v436_v48, %v434_v47 }
  0x82   : > { %1212 = vmatpush1.bf16.msra.mxu0 %v1211_v58  ;;  %v441_v53 = vld [vmem:[#allocation2 + $0x1f8] sm:$0xff]  ;;  %v577_v54 = vld [vmem:[#allocation4 + $0x1e8] sm:$0xff]  ;;  %v1295_v57 = vpack.c.bf16 %v574_v51, %v572_v49  ;;  %v576_v62 = vld [vmem:[#allocation4 + $0x1e0] sm:$0xff] }
  0x83   : > { %1276 = vmatpush1.bf16.msra.mxu1 %v1275_v59  ;;  %1214 = vmatprep.subr.bf16.mxu0 %v1213_v60  ;;  %v579_v55 = vld [vmem:[#allocation4 + $0x1f8] sm:$0xff]  ;;  %v1233_v58 = vpack.c.bf16 %v441_v53, %v439_v52  ;;  %v438_v59 = vld [vmem:[#allocation2 + $0x1e0] sm:$0xff]  ;;  %v440_v60 = vld [vmem:[#allocation2 + $0x1f0] sm:$0xff] }
  0x84   : > { %1278 = vmatprep.subr.bf16.mxu1 %v1277_v0  ;;  %v1297_v61 = vpack.c.bf16 %v579_v55, %v577_v54  ;;  %v578_v63 = vld [vmem:[#allocation4 + $0x1f0] sm:$0xff]  ;;  %v1235_v0 = vpack.c.bf16 %v440_v60, %v438_v59  ;;  %v815_v3 = vld [vmem:[%s1854_s7] sm:$0xff]  ;;  %v826_v7 = vld [vmem:[#allocation6 + $0x18] sm:$0xff] }
  0x85   : > { %v1299_v1 = vpack.c.bf16 %v578_v63, %v576_v62  ;;  %818 = vperm.xlu0 %1420, %v815_v3   ;;  %v1047_v5 = vld [vmem:[%s1855_s8] sm:$0xf]  ;;  %v860_v10 = vld [vmem:[%s1851_s4 + $0x8] sm:$0xff]  ;;  %v862_v11 = vld [vmem:[%s1851_s4 + $0x18] sm:$0xff] }
  0x86   : > { %1216 = vmatpush1.bf16.msra.mxu0 %v1215_v6  ;;  %v824_v6 = vld [vmem:[#allocation6 + $0x8] sm:$0xff]  ;;  %v859_v12 = vld [vmem:[%s1851_s4] sm:$0xff]  ;;  %v861_v14 = vld [vmem:[%s1851_s4 + $0x10] sm:$0xff] }
  0x87   : > { %1280 = vmatpush1.bf16.msra.mxu1 %v1279_v8  ;;  %1218 = vmatprep.subr.bf16.mxu0 %v1217_v9  ;;  %v823_v8 = vld [vmem:[#allocation6] sm:$0xff]  ;;  %v825_v9 = vld [vmem:[#allocation6 + $0x10] sm:$0xff]  ;;  %v828_v15 = vld [vmem:[#allocation6 + $0x28] sm:$0xff]  ;;  %v1303_v27 = vpack.c.bf16 %v861_v14, %v859_v12 }
  0x88   : > { %1282 = vmatprep.subr.bf16.mxu1 %v1281_v13  ;;  %v651_v19 = vld [vmem:[%s1852_s5] sm:$0xff]  ;;  %v1339_v25 = vpack.c.bf16 %v825_v9, %v823_v8  ;;  %v829_v30 = vld [vmem:[#allocation6 + $0x30] sm:$0xff]  ;;  %v834_v35 = vld [vmem:[#allocation6 + $0x58] sm:$0xff] }
  0x89   : > { %1050 = vperm.xlu0 %1420, %v1047_v5   ;;  %v652_v24 = vld [vmem:[%s1853_s6] sm:$0xff]  ;;  %v868_v36 = vld [vmem:[%s1851_s4 + $0x48] sm:$0xff]  ;;  %v870_v37 = vld [vmem:[%s1851_s4 + $0x58] sm:$0xff] }
  0x8a   : > { %1220 = vmatpush1.bf16.msra.mxu0 %v1219_v20  ;;  %v1337_v20 = vpack.c.bf16 %v826_v7, %v824_v6  ;;  %v827_v29 = vld [vmem:[#allocation6 + $0x20] sm:$0xff]  ;;  %v833_v42 = vld [vmem:[#allocation6 + $0x50] sm:$0xff]  ;;  %v838_v47 = vld [vmem:[#allocation6 + $0x78] sm:$0xff] }
  0x8b   : > { %1284 = vmatpush1.bf16.msra.mxu1 %v1283_v21  ;;  %1222 = vmatprep.subr.bf16.mxu0 %v1221_v22  ;;  %v864_v21 = vld [vmem:[%s1851_s4 + $0x28] sm:$0xff]  ;;  %v866_v22 = vld [vmem:[%s1851_s4 + $0x38] sm:$0xff]  ;;  %v863_v31 = vld [vmem:[%s1851_s4 + $0x20] sm:$0xff] }
  0x8c   : > { %1286 = vmatprep.subr.bf16.mxu1 %v1285_v26  ;;  %v1301_v26 = vpack.c.bf16 %v862_v11, %v860_v10  ;;  %v831_v41 = vld [vmem:[#allocation6 + $0x40] sm:$0xff]  ;;  %v872_v48 = vld [vmem:[%s1851_s4 + $0x68] sm:$0xff]  ;;  %v874_v49 = vld [vmem:[%s1851_s4 + $0x78] sm:$0xff] }
  0x8d   : > { %v867_v43 = vld [vmem:[%s1851_s4 + $0x40] sm:$0xff]  ;;  %v837_v54 = vld [vmem:[#allocation6 + $0x70] sm:$0xff]  ;;  %v842_v59 = vld [vmem:[#allocation6 + $0x98] sm:$0xff] }
  0x8e   : > { %1224 = vmatpush1.bf16.msra.mxu0 %v1223_v32  ;;  %v1305_v32 = vpack.c.bf16 %v866_v22, %v864_v21  ;;  %v835_v53 = vld [vmem:[#allocation6 + $0x60] sm:$0xff]  ;;  %v876_v60 = vld [vmem:[%s1851_s4 + $0x88] sm:$0xff]  ;;  %v877_v5 = vld [vmem:[%s1851_s4 + $0x90] sm:$0xff] }
  0x8f   : > { %1288 = vmatpush1.bf16.msra.mxu1 %v1287_v33  ;;  %1226 = vmatprep.subr.bf16.mxu0 %v1225_v34  ;;  %v865_v33 = vld [vmem:[%s1851_s4 + $0x30] sm:$0xff]  ;;  %v832_v34 = vld [vmem:[#allocation6 + $0x48] sm:$0xff]  ;;  %v871_v55 = vld [vmem:[%s1851_s4 + $0x60] sm:$0xff]  ;;  %v1351_v62 = vpack.c.bf16 %v837_v54, %v835_v53 }
  0x90   : > { %1290 = vmatprep.subr.bf16.mxu1 %v1289_v38  ;;  %v1343_v38 = vpack.c.bf16 %v829_v30, %v827_v29  ;;  %v1307_v39 = vpack.c.bf16 %v865_v33, %v863_v31  ;;  %v1345_v40 = vpack.c.bf16 %v834_v35, %v832_v34  ;;  %v875_v3 = vld [vmem:[%s1851_s4 + $0x80] sm:$0xff]  ;;  %v844_v6 = vld [vmem:[#allocation6 + $0xa8] sm:$0xff]  ;;  %v846_v7 = vld [vmem:[#allocation6 + $0xb8] sm:$0xff] }
  0x91   : > { %v880_v8 = vld [vmem:[%s1851_s4 + $0xa8] sm:$0xff]  ;;  %v882_v9 = vld [vmem:[%s1851_s4 + $0xb8] sm:$0xff]  ;;  %v1319_v11 = vpack.c.bf16 %v877_v5, %v875_v3  ;;  %v1357_v12 = vpack.c.bf16 %v846_v7, %v844_v6  ;;  %v845_v14 = vld [vmem:[#allocation6 + $0xb0] sm:$0xff] }
  0x92   : > { %1228 = vmatpush1.bf16.msra.mxu0 %v1227_v44  ;;  %v1309_v44 = vpack.c.bf16 %v870_v37, %v868_v36  ;;  %v886_v21 = vld [vmem:[%s1851_s4 + $0xd8] sm:$0xff]  ;;  %v885_v29 = vld [vmem:[%s1851_s4 + $0xd0] sm:$0xff]  ;;  %v852_v30 = vld [vmem:[#allocation6 + $0xe8] sm:$0xff] }
  0x93   : > { %1292 = vmatpush1.bf16.msra.mxu1 %v1291_v45  ;;  %1230 = vmatprep.subr.bf16.mxu0 %v1229_v46  ;;  %v869_v45 = vld [vmem:[%s1851_s4 + $0x50] sm:$0xff]  ;;  %v836_v46 = vld [vmem:[#allocation6 + $0x68] sm:$0xff]  ;;  %v854_v31 = vld [vmem:[#allocation6 + $0xf8] sm:$0xff] }
  0x94   : > { %1294 = vmatprep.subr.bf16.mxu1 %v1293_v50  ;;  %v1347_v50 = vpack.c.bf16 %v833_v42, %v831_v41  ;;  %v1311_v51 = vpack.c.bf16 %v869_v45, %v867_v43  ;;  %v1349_v52 = vpack.c.bf16 %v838_v47, %v836_v46  ;;  %v1365_v34 = vpack.c.bf16 %v854_v31, %v852_v30  ;;  %v851_v35 = vld [vmem:[#allocation6 + $0xe0] sm:$0xff]  ;;  %v853_v36 = vld [vmem:[#allocation6 + $0xf0] sm:$0xff]  ;;  %v858_v45 = vld [vmem:[#allocation6 + $0x118] sm:$0xff] }
  0x95   : > { %v1367_v37 = vpack.c.bf16 %v853_v36, %v851_v35  ;;  %v887_v41 = vld [vmem:[%s1851_s4 + $0xe0] sm:$0xff]  ;;  %v889_v42 = vld [vmem:[%s1851_s4 + $0xf0] sm:$0xff] }
  0x96   : > { %1232 = vmatpush1.bf16.msra.mxu0 %v1231_v56  ;;  %v1313_v56 = vpack.c.bf16 %v874_v49, %v872_v48  ;;  %v1331_v43 = vpack.c.bf16 %v889_v42, %v887_v41  ;;  %v855_v47 = vld [vmem:[#allocation6 + $0x100] sm:$0xff]  ;;  %v857_v48 = vld [vmem:[#allocation6 + $0x110] sm:$0xff] }
  0x97   : > { %1296 = vmatpush1.bf16.msra.mxu1 %v1295_v57  ;;  %1234 = vmatprep.subr.bf16.mxu0 %v1233_v58  ;;  %v873_v57 = vld [vmem:[%s1851_s4 + $0x70] sm:$0xff]  ;;  %v840_v58 = vld [vmem:[#allocation6 + $0x88] sm:$0xff]  ;;  %v1371_v49 = vpack.c.bf16 %v857_v48, %v855_v47  ;;  %v891_v53 = vld [vmem:[%s1851_s4 + $0x100] sm:$0xff] }
  0x98   : > { %1298 = vmatprep.subr.bf16.mxu1 %v1297_v61  ;;  %v878_v61 = vld [vmem:[%s1851_s4 + $0x98] sm:$0xff]  ;;  %v1315_v63 = vpack.c.bf16 %v873_v57, %v871_v55  ;;  %v893_v54 = vld [vmem:[%s1851_s4 + $0x110] sm:$0xff] }
  0x99   : > { %v1317_v4 = vpack.c.bf16 %v878_v61, %v876_v60  ;;  %v1335_v55 = vpack.c.bf16 %v893_v54, %v891_v53 }
  0x9a   : > { %1236 = vmatpush1.bf16.msra.mxu0 %v1235_v0  ;;  %v1353_v0 = vpack.c.bf16 %v842_v59, %v840_v58 }
  0x9b   : > { %1300 = vmatpush1.bf16.msra.mxu1 %v1299_v1  ;;  %v839_v1 = vld [vmem:[#allocation6 + $0x80] sm:$0xff] }
  0x9d   : > { %510 = vmatmul.mubr.f32.vlgmr.msra.gmra.mrb[0].mxu0 %v1707_v16 }
  0x9e   : > { %645 = vmatmul.mubr.f32.vlgmr.msra.gmra.mrb[0].mxu1 %v1707_v16  ;;  %808 = vmatprep.mubr.f32.mxu0 %v1527_v2  ;;  %v830_v16 = vld [vmem:[#allocation6 + $0x38] sm:$0xff] }
  0x9f   : > { %728 = vmatprep.mubr.f32.mxu1 %v1527_v2  ;;  %v1341_v28 = vpack.c.bf16 %v830_v16, %v828_v15  ;;  %v841_v2 = vld [vmem:[#allocation6 + $0x90] sm:$0xff]  ;;  %v879_v15 = vld [vmem:[%s1851_s4 + $0xa0] sm:$0xff]  ;;  %v1321_v16 = vpack.c.bf16 %v882_v9, %v880_v8 }
  0xa0   : > { %v1355_v10 = vpack.c.bf16 %v841_v2, %v839_v1 }
 0x170   : > { %v511_v13 = vpop.f32.mrb[0].mxu0 }
 0x171   : > { %v646_v17 = vpop.f32.mrb[0].mxu1  ;;  %v513_v18 = vpop.f32.mrb[1].mxu0 }
 0x172   : > { %v648_v23 = vpop.f32.mrb[1].mxu1  ;;  %1164 = vmatprep.subr.msk.mxu0 %vm657_vm0, %v513_v18  ;;  %v848_v18 = vld [vmem:[#allocation6 + $0xc8] sm:$0xff] }
 0x173   : > { %1161 = vmatprep.subr.msk.mxu1 %vm657_vm0, %v648_v23  ;;  %1165 = vmatpush1.msk.msra.mxu0 %vm657_vm0, %v511_v13  ;;  %v843_v13 = vld [vmem:[#allocation6 + $0xa0] sm:$0xff] }
 0x174   : > { %1162 = vmatpush1.msk.msra.mxu1 %vm657_vm0, %v646_v17  ;;  %1166 = vmatmul.mubr.msk.f32.vlgmr.msra.gmra.mrb[2].mxu0 %vm653_vm1, %v651_v19  ;;  %v881_v17 = vld [vmem:[%s1851_s4 + $0xb0] sm:$0xff]  ;;  %v850_v19 = vld [vmem:[#allocation6 + $0xd8] sm:$0xff]  ;;  %v1359_v22 = vpack.c.bf16 %v845_v14, %v843_v13 }
 0x175   : > { %1163 = vmatmul.mubr.msk.f32.vlgmr.msra.gmra.mrb[2].mxu1 %vm653_vm1, %v652_v24  ;;  %1338 = vmatprep.subr.bf16.mxu1 %v1337_v20  ;;  %v884_v20 = vld [vmem:[%s1851_s4 + $0xc8] sm:$0xff]  ;;  %v1323_v23 = vpack.c.bf16 %v881_v17, %v879_v15  ;;  %v1361_v24 = vpack.c.bf16 %v850_v19, %v848_v18 }
 0x176   : > { %1340 = vmatpush1.bf16.msra.mxu1 %v1339_v25  ;;  %1302 = vmatprep.subr.bf16.mxu0 %v1301_v26  ;;  %v847_v25 = vld [vmem:[#allocation6 + $0xc0] sm:$0xff]  ;;  %v849_v26 = vld [vmem:[#allocation6 + $0xd0] sm:$0xff] }
 0x177   : > { %1304 = vmatpush1.bf16.msra.mxu0 %v1303_v27  ;;  %1342 = vmatprep.subr.bf16.mxu1 %v1341_v28  ;;  %v883_v27 = vld [vmem:[%s1851_s4 + $0xc0] sm:$0xff]  ;;  %v1325_v28 = vpack.c.bf16 %v886_v21, %v884_v20 }
 0x178   : > { %1306 = vmatprep.subr.bf16.mxu0 %v1305_v32  ;;  %v1363_v32 = vpack.c.bf16 %v849_v26, %v847_v25  ;;  %v1327_v33 = vpack.c.bf16 %v885_v29, %v883_v27 }
 0x17a   : > { %1344 = vmatpush1.bf16.msra.mxu1 %v1343_v38  ;;  %v888_v38 = vld [vmem:[%s1851_s4 + $0xe8] sm:$0xff] }
 0x17b   : > { %1308 = vmatpush1.bf16.msra.mxu0 %v1307_v39  ;;  %1346 = vmatprep.subr.bf16.mxu1 %v1345_v40  ;;  %v890_v39 = vld [vmem:[%s1851_s4 + $0xf8] sm:$0xff] }
 0x17c   : > { %1310 = vmatprep.subr.bf16.mxu0 %v1309_v44  ;;  %v1329_v40 = vpack.c.bf16 %v890_v39, %v888_v38  ;;  %v856_v44 = vld [vmem:[#allocation6 + $0x108] sm:$0xff] }
 0x17d   : > { %v1369_v46 = vpack.c.bf16 %v858_v45, %v856_v44 }
 0x17e   : > { %1348 = vmatpush1.bf16.msra.mxu1 %v1347_v50  ;;  %v892_v50 = vld [vmem:[%s1851_s4 + $0x108] sm:$0xff] }
 0x17f   : > { %1312 = vmatpush1.bf16.msra.mxu0 %v1311_v51  ;;  %1350 = vmatprep.subr.bf16.mxu1 %v1349_v52  ;;  %v894_v51 = vld [vmem:[%s1851_s4 + $0x118] sm:$0xff] }
 0x180   : > { %1314 = vmatprep.subr.bf16.mxu0 %v1313_v56  ;;  %v1333_v52 = vpack.c.bf16 %v894_v51, %v892_v50 }
 0x182   : > { %1352 = vmatpush1.bf16.msra.mxu1 %v1351_v62  ;;  %v819_v62 = vpop.permute.xlu0 %818 }
 0x183   : > { %1316 = vmatpush1.bf16.msra.mxu0 %v1315_v63  ;;  %1354 = vmatprep.subr.bf16.mxu1 %v1353_v0 }
 0x184   : > { %1318 = vmatprep.subr.bf16.mxu0 %v1317_v4 }
 0x186   : > { %1356 = vmatpush1.bf16.msra.mxu1 %v1355_v10  ;;  %v1051_v8 = vpop.permute.xlu0 %1050 }
 0x187   : > { %1320 = vmatpush1.bf16.msra.mxu0 %v1319_v11  ;;  %1358 = vmatprep.subr.bf16.mxu1 %v1357_v12 }
 0x188   : > { %1322 = vmatprep.subr.bf16.mxu0 %v1321_v16 }
 0x18a   : > { %1360 = vmatpush1.bf16.msra.mxu1 %v1359_v22 }
 0x18b   : > { %1324 = vmatpush1.bf16.msra.mxu0 %v1323_v23  ;;  %1362 = vmatprep.subr.bf16.mxu1 %v1361_v24 }
 0x18c   : > { %1326 = vmatprep.subr.bf16.mxu0 %v1325_v28 }
 0x18e   : > { %1364 = vmatpush1.bf16.msra.mxu1 %v1363_v32 }
 0x18f   : > { %1328 = vmatpush1.bf16.msra.mxu0 %v1327_v33  ;;  %1366 = vmatprep.subr.bf16.mxu1 %v1365_v34 }
 0x190   : > { %1330 = vmatprep.subr.bf16.mxu0 %v1329_v40 }
 0x192   : > { %1368 = vmatpush1.bf16.msra.mxu1 %v1367_v37 }
 0x193   : > { %1332 = vmatpush1.bf16.msra.mxu0 %v1331_v43  ;;  %1370 = vmatprep.subr.bf16.mxu1 %v1369_v46 }
 0x194   : > { %1334 = vmatprep.subr.bf16.mxu0 %v1333_v52 }
 0x196   : > { %1372 = vmatpush1.bf16.msra.mxu1 %v1371_v49 }
 0x197   : > { %1336 = vmatpush1.bf16.msra.mxu0 %v1335_v55 }
 0x247   : > { %v810_v56 = vpop.f32.mrb[2].mxu0 }
 0x248   : > { %v730_v57 = vpop.f32.mrb[2].mxu1  ;;  %v812_v58 = vpop.f32.mrb[3].mxu0 }
 0x249   : > { %v811_v59 = vadd.f32 %v810_v56, %v730_v57  ;;  %v732_v60 = vpop.f32.mrb[3].mxu1 }
 0x24a   : > { %v813_v61 = vadd.f32 %v812_v58, %v732_v60 }
 0x24b   : > { %v821_v63 = vadd.f32 %v819_v62, %v811_v59 }
 0x24c   : > { %v822_v0 = vadd.f32 %v819_v62, %v813_v61 }
 0x24d   : > { %v897_v2 = vrot.slane %v821_v63, 4 }
 0x24e   : > { %v898_v1 = vrot.slane %v822_v0, 4  ;;  %1168 = vmatprep.mubr.msk.f32.mxu1 %vm900_vm2, %v822_v0 }
 0x24f   : > { %1041 = vmatmul.mubr.f32.vlgmr.msra.gmra.mrb[4].mxu1 %v821_v63 }
 0x250   : > { %1167 = vmatprep.mubr.msk.f32.mxu0 %vm900_vm2, %v898_v1 }
 0x251   : > { %968 = vmatmul.mubr.f32.vlgmr.msra.gmra.mrb[4].mxu0 %v897_v2 }
 0x322   : > { %v1042_v3 = vpop.f32.mrb[4].mxu1 }
 0x323   : > { %v1044_v4 = vpop.f32.mrb[5].mxu1 }
 0x324   : > { %v969_v5 = vpop.f32.mrb[4].mxu0 }
 0x325   : > { %v1043_v6 = vadd.f32 %v1042_v3, %v969_v5  ;;  %v971_v7 = vpop.f32.mrb[5].mxu0 }
 0x326   : > { %v1045_v9 = vadd.f32 %v1044_v4, %v971_v7 }
 0x327   : > { %v1053_v10 = vadd.f32 %v1051_v8, %v1043_v6 }
 0x328   : > { %v1054_v11 = vadd.f32 %v1051_v8, %v1045_v9 }
 0x32a   : > { %v1057_v12 = vcombine.low %v1053_v10, %v1054_v11 }
 0x32c   : > { %1059 = vst [vmem:[%s376_s21] sm:$0xff] %v1057_v12 }
 0x32d PF: > { %s21_s30 = sadd.s32 1, %s1520_s30  }
 0x32e   : > { %p18_p9 = scmp.ge.s32.totalorder %s21_s30, 4  }
 0x330   :  { %20 = sbr.rel (!%p18_p9) target bundleno = 2 (0x2), region = 99 }
 0x337   :  { %1081 = vsyncpa [#allocation3], 1 }
 0x338   :  { %1083 = vsyncpa [#allocation3 + $0x1], 1 }
 0x339   :  { %1084 = vsyncpa [#allocation5], 1 }

</bundles_post_ra>
